<compile_context>
chip_gen: v7x
topology: tpu7x:2x2x1
jax: 0.10.0
libtpu: 0.0.40
codegen_flags: <defaults>
</compile_context>

<pallas_src>
import functools

import jax
import jax.numpy as jnp
from jax import lax
from jax.experimental import pallas as pl
from jax.experimental.pallas import tpu as pltpu


def _interp_matrix(n_in: int, n_out: int) -> jnp.ndarray:
    """(n_out, n_in) 1-D linear interpolation matrix, align_corners=True
    (matches torch F.interpolate(..., mode='bilinear', align_corners=True))."""
    if n_in == 1:
        return jnp.ones((n_out, 1), jnp.float32)
    src = jnp.arange(n_out, dtype=jnp.float32) * (n_in - 1) / (n_out - 1)
    i0 = jnp.clip(jnp.floor(src).astype(jnp.int32), 0, n_in - 2)
    frac = src - i0.astype(jnp.float32)
    cols = jnp.arange(n_in, dtype=jnp.int32)
    low = (cols[None, :] == i0[:, None]).astype(jnp.float32) * (1.0 - frac)[:, None]
    high = (cols[None, :] == (i0 + 1)[:, None]).astype(jnp.float32) * frac[:, None]
    return low + high


def _pick_blocks(B, C, H, W, Ho, Wo, budget_bytes=8 << 20):
    """Choose (batch_block, channel_block) so one grid step's VMEM footprint
    (double-buffered in/out tiles + f32 intermediates) stays within budget.
    8 MiB/step is safe against v5e's 16 MiB scoped-VMEM default and v7x's
    64 MiB physical VMEM; we also keep >= 2 grid steps when possible so both
    v7x TensorCores receive work."""

    def step_bytes(bb, cb):
        g = bb * cb
        in_blk = g * H * W                 # input tile
        out_blk = g * Ho * Wo              # output tile
        interm = g * (H * Wo + Ho * H)     # column-pass result + row weights
        return 4 * (2 * (in_blk + out_blk) + interm)   # f32, dbl-buffered I/O

    def divs(n):
        return [d for d in range(n, 0, -1) if n % d == 0]

    cb = next((d for d in divs(C) if step_bytes(1, d) <= budget_bytes), 1)
    bb = 1
    for d in divs(B):
        if step_bytes(d, cb) > budget_bytes:
            continue
        if (B // d) * (C // cb) >= 2:
            bb = d
            break
    # NOTE: for very large H*W the full-extent spatial block may still exceed
    # the scoped VMEM limit; spatial (row) tiling would be the next step.
    return bb, cb


def _deconv_kernel(x_ref, wcol_ref, wrow_ref, o_ref, *, bb, cb, H, W, Ho, Wo):
    # x_ref:    (bb, cb*H, W)   batch/channel block, channels folded into rows
    # wcol_ref: (W, Wo)         column-interpolation matrix (already transposed)
    # wrow_ref: (Ho, H)         row-interpolation matrix
    # o_ref:    (bb, cb, Ho, Wo)
    g = bb * cb
    x = x_ref[...].reshape(g * H, W)                    # leading-dim merge only

    # Column pass: ONE flat MXU GEMM, M = bb*cb*H, K = W, N = Wo.
    y = jnp.dot(x, wcol_ref[...], preferred_element_type=jnp.float32)   # (g*H, Wo)
    y = y.reshape(g, H, Wo).astype(x.dtype)             # leading-dim split only

    # Row pass: batched over the bb*cb images (Mosaic supports 2D or
    # equal-batch-dim dots only; see header note).  Broadcast of the small
    # (Ho, H) weight tile is hoisted once per step, not per channel loop.
    wrow_b = jnp.broadcast_to(wrow_ref[...][None], (g, Ho, H))
    out = lax.dot_general(wrow_b, y, (((2,), (1,)), ((0,), (0,))),
                          preferred_element_type=jnp.float32)            # (g, Ho, Wo)

    o_ref[...] = out.reshape(bb, cb, Ho, Wo).astype(o_ref.dtype)


def deconvolution(x, feature_shape=None, *, use_bf16=False):
    """Bilinear 2x upsample of NCHW x, align_corners=True (torch semantics)."""
    B, C, H, W = x.shape
    if feature_shape is None:
        feature_shape = (H, W)
    Ho, Wo = 2 * feature_shape[0], 2 * feature_shape[1]

    wrow = _interp_matrix(H, Ho)          # (Ho, H)
    wcol = _interp_matrix(W, Wo).T        # (W, Wo)

    # bf16 inputs halve the dominant HBM stream and run the MXU at native
    # rate; accumulation stays f32.  Default keeps f32 end-to-end.
    in_dtype = jnp.bfloat16 if use_bf16 else x.dtype
    x_rows = x.reshape(B, C * H, W).astype(in_dtype)
    wrow = wrow.astype(in_dtype)
    wcol = wcol.astype(in_dtype)

    bb, cb = _pick_blocks(B, C, H, W, Ho, Wo)
    kernel = functools.partial(_deconv_kernel, bb=bb, cb=cb, H=H, W=W, Ho=Ho, Wo=Wo)

    return pl.pallas_call(
        kernel,
        out_shape=jax.ShapeDtypeStruct((B, C, Ho, Wo), x.dtype),
        grid_spec=pltpu.PrefetchScalarGridSpec(
            num_scalar_prefetch=0,
            grid=(B // bb, C // cb),
            in_specs=[
                pl.BlockSpec((bb, cb * H, W), lambda b, c: (b, c, 0)),   # x block
                pl.BlockSpec((W, Wo), lambda b, c: (0, 0)),              # wcol
                pl.BlockSpec((Ho, H), lambda b, c: (0, 0)),              # wrow
            ],
            out_specs=pl.BlockSpec((bb, cb, Ho, Wo), lambda b, c: (b, c, 0, 0)),
        ),
        compiler_params=pltpu.CompilerParams(
            dimension_semantics=("parallel", "parallel")),
    )(x_rows, wcol, wrow)


def reference(x, feature_shape=None):
    """Gather-based pure-JAX reference of torch bilinear, align_corners=True."""
    B, C, H, W = x.shape
    if feature_shape is None:
        feature_shape = (H, W)
    Ho, Wo = 2 * feature_shape[0], 2 * feature_shape[1]

    def coords(n_in, n_out):
        if n_in == 1:
            z = jnp.zeros((n_out,), jnp.int32)
            return z, z, jnp.zeros((n_out,), jnp.float32)
        src = jnp.arange(n_out, dtype=jnp.float32) * (n_in - 1) / (n_out - 1)
        i0 = jnp.clip(jnp.floor(src).astype(jnp.int32), 0, n_in - 2)
        return i0, i0 + 1, src - i0.astype(jnp.float32)

    r0, r1, rf = coords(H, Ho)
    c0, c1, cf = coords(W, Wo)
    cf_ = cf[None, None, None, :]
    rf_ = rf[None, None, :, None]
    top = x[:, :, r0, :][:, :, :, c0] * (1 - cf_) + x[:, :, r0, :][:, :, :, c1] * cf_
    bot = x[:, :, r1, :][:, :, :, c0] * (1 - cf_) + x[:, :, r1, :][:, :, :, c1] * cf_
    return top * (1 - rf_) + bot * rf_


if __name__ == "__main__":
    B, C, H, W = 2, 4, 16, 16
    key = jax.random.PRNGKey(0)
    x = jax.random.normal(key, (B, C, H, W), dtype=jnp.float32)

    ref = jax.block_until_ready(reference(x, feature_shape=(H, W)))

    # f32 path (exact torch semantics).
    out = jax.block_until_ready(deconvolution(x, feature_shape=(H, W)))
    assert out.shape == (B, C, 2 * H, 2 * W)
    assert jnp.allclose(out, ref, atol=1e-4, rtol=1e-4), "f32 mismatch vs reference"

    # bf16-input path (review suggestion): looser tolerance for bf16 rounding.
    out_bf16 = jax.block_until_ready(
        deconvolution(x, feature_shape=(H, W), use_bf16=True))
    assert out_bf16.shape == (B, C, 2 * H, 2 * W)
    assert jnp.allclose(out_bf16, ref, atol=1e-1, rtol=1e-1), "bf16 mismatch"

    print("KERNEL_OK")
</pallas_src>

<mosaic_0001>
module attributes {stable_mosaic.version = 11 : i64} {
  func.func @_deconv_kernel(%arg0: i32, %arg1: i32, %arg2: memref<1x64x16xf32, #tpu.memory_space<vmem>>, %arg3: memref<16x32xf32, #tpu.memory_space<vmem>>, %arg4: memref<32x16xf32, #tpu.memory_space<vmem>>, %arg5: memref<1x4x32x32xf32, #tpu.memory_space<vmem>>) attributes {dimension_semantics = [#tpu.dimension_semantics<parallel>, #tpu.dimension_semantics<parallel>], iteration_bounds = array<i64: 2, 1>, scalar_prefetch = 0 : i64, scratch_operands = 0 : i64, tpu.core_type = #tpu.core_type<tc>, window_params = [{transform_indices = @transform_0, window_bounds = array<i64: 1, 64, 16>}, {pipeline_mode = #tpu.pipeline_mode<synchronous>, transform_indices = @transform_1, window_bounds = array<i64: 16, 32>}, {pipeline_mode = #tpu.pipeline_mode<synchronous>, transform_indices = @transform_2, window_bounds = array<i64: 32, 16>}, {transform_indices = @transform_3, window_bounds = array<i64: 1, 4, 32, 32>}]} {
    %c0 = arith.constant 0 : index
    %c0_0 = arith.constant 0 : index
    %c0_1 = arith.constant 0 : index
    %0 = vector.load %arg2[%c0, %c0_0, %c0_1] : memref<1x64x16xf32, #tpu.memory_space<vmem>>, vector<1x64x16xf32>
    %1 = vector.shape_cast %0 : vector<1x64x16xf32> to vector<64x16xf32>
    %c0_2 = arith.constant 0 : index
    %c0_3 = arith.constant 0 : index
    %2 = vector.load %arg3[%c0_2, %c0_3] : memref<16x32xf32, #tpu.memory_space<vmem>>, vector<16x32xf32>
    %cst = arith.constant dense<0.000000e+00> : vector<64x32xf32>
    %3 = tpu.matmul %1, %2, %cst {dimension_numbers = #tpu.dot_dimension_numbers<[1], [0], [0], [1], [0, 0, 1, 1], [], []>} : vector<64x16xf32>, vector<16x32xf32>, vector<64x32xf32> -> vector<64x32xf32>
    %4 = vector.shape_cast %3 : vector<64x32xf32> to vector<4x16x32xf32>
    %c0_4 = arith.constant 0 : index
    %c0_5 = arith.constant 0 : index
    %5 = vector.load %arg4[%c0_4, %c0_5] : memref<32x16xf32, #tpu.memory_space<vmem>>, vector<32x16xf32>
    %6 = vector.shape_cast %5 : vector<32x16xf32> to vector<1x32x16xf32>
    %7 = vector.shape_cast %6 : vector<1x32x16xf32> to vector<1x32x16xf32>
    %8 = vector.broadcast %7 : vector<1x32x16xf32> to vector<4x32x16xf32>
    %cst_6 = arith.constant dense<0.000000e+00> : vector<4x32x32xf32>
    %9 = tpu.matmul %8, %4, %cst_6 {dimension_numbers = #tpu.dot_dimension_numbers<[2], [1], [1], [2], [0, 0, 0, 1, 1, 2], [0], [0]>} : vector<4x32x16xf32>, vector<4x16x32xf32>, vector<4x32x32xf32> -> vector<4x32x32xf32>
    %10 = vector.shape_cast %9 : vector<4x32x32xf32> to vector<1x4x32x32xf32>
    %c0_7 = arith.constant 0 : index
    %c0_8 = arith.constant 0 : index
    %c0_9 = arith.constant 0 : index
    %c0_10 = arith.constant 0 : index
    %11 = vector.load %arg5[%c0_7, %c0_8, %c0_9, %c0_10] : memref<1x4x32x32xf32, #tpu.memory_space<vmem>>, vector<1x4x32x32xf32>
    tpu.vector_store %arg5[%c0_7, %c0_8, %c0_9, %c0_10], %10 {strides = array<i32>} : memref<1x4x32x32xf32, #tpu.memory_space<vmem>>, vector<1x4x32x32xf32>,
    return
  }
  func.func @transform_0(%arg0: i32, %arg1: i32) -> (i32, i32, i32) {
    %c0_i32 = arith.constant 0 : i32
    %c0_i32_0 = arith.constant 0 : i32
    return %arg0, %arg1, %c0_i32 : i32, i32, i32
  }
  func.func @transform_1(%arg0: i32, %arg1: i32) -> (i32, i32) {
    %c0_i32 = arith.constant 0 : i32
    %c0_i32_0 = arith.constant 0 : i32
    %c0_i32_1 = arith.constant 0 : i32
    return %c0_i32, %c0_i32_0 : i32, i32
  }
  func.func @transform_2(%arg0: i32, %arg1: i32) -> (i32, i32) {
    %c0_i32 = arith.constant 0 : i32
    %c0_i32_0 = arith.constant 0 : i32
    %c0_i32_1 = arith.constant 0 : i32
    return %c0_i32, %c0_i32_0 : i32, i32
  }
  func.func @transform_3(%arg0: i32, %arg1: i32) -> (i32, i32, i32, i32) {
    %c0_i32 = arith.constant 0 : i32
    %c0_i32_0 = arith.constant 0 : i32
    %c0_i32_1 = arith.constant 0 : i32
    return %arg0, %arg1, %c0_i32, %c0_i32_0 : i32, i32, i32, i32
  }
}

</mosaic_0001>

<bundles_post_ra>
// kernel: tpu_custom_call.1
= control target key start
LH: loop header
LB: loop body
LE: loop exit
PB: predicated region body
PF: predicated region fallthrough
CT: control target
= control target key end

     0   :  { %8 = vsyncpa [#allocation3], 0  ;;  %s1314_s0 = inlined_call_operand.vmem [shape: f32[2,64,16], index: 0, kind: input, shape index: {}]   ;;  %s1315_s1 = inlined_call_operand.vmem [shape: f32[16,32], index: 1, kind: input, shape index: {}]   ;;  %s1316_s2 = inlined_call_operand.vmem [shape: f32[32,16], index: 2, kind: input, shape index: {}]   ;;  %s1317_s3 = inlined_call_operand.hbm [shape: f32[2,4,32,32], index: 3, kind: output, shape index: {}]  }
   0x1   :  { %10 = vsyncpa [#allocation3 + $0x1], 0  ;;  %s1118_s12 = smov 0   ;;  %s1120_s13 = smov 0  }
   0x2   :  { %s1122_s14 = smov 0   ;;  %s1124_s15 = smov 0  }
   0x3   :  { %s1126_s16 = smov 0   ;;  %s1128_s17 = smov 0  }
   0x4 LB: > { %s809_s18 = sadd.s32 4294967295, %s1093_s17   ;;  %s810_s19 = sadd.s32 4294967294, %s1093_s17   ;;  %s1093_s17 = sphi %s1128_s17, %s16_s17   ;;  %s1089_s16 = sphi %s1126_s16, %s1324_s16   ;;  %s1085_s15 = sphi %s1124_s15, %s1323_s15   ;;  %s1081_s14 = sphi %s1122_s14, %s1322_s14   ;;  %s1077_s13 = sphi %s1120_s13, %s1321_s13   ;;  %s1073_s12 = sphi %s1118_s12, %s1320_s12  }
   0x5   : > { %s28_s20 = sadd.s32 1, %s1089_s16  ;;  %s107_s21 = sadd.s32 1, %s1081_s14 }
   0x6   : > { %p30_p0 = scmp.ge.s32.totalorder %s28_s20, 2  ;;  %p117_p1 = scmp.ne.s32.totalorder %s1081_s14, %s1077_s13 }
   0x7   : > { %p118_p2 = scmp.eq.s32.totalorder %s809_s18, 1  ;;  %p123_p3 = scmp.ne.s32.totalorder %s1077_s13, %s1073_s12 }
   0x8   : > { %s1326_s20 = smov (%p30_p0, %s28_s20), 0  ;;  %p124_p5 = scmp.eq.s32.totalorder %s810_s19, 1 }
   0x9   : > { %p1158_p4 = por %p118_p2, %p117_p1  ;;  %s102_s23 = ssub.s32 %s1089_s16, %s1326_s20 }
   0xa   : > { %p813_p6 = scmp.ge.s32.totalorder %s1093_s17, 1  ;;  %p105_p7 = scmp.eq.s32.totalorder %s102_s23, 0 }
   0xb   : > { %p1165_p8 = por %p124_p5, %p123_p3  ;;  %p161_p9 = scmp.lt.s32.totalorder %s1093_s17, 3 }
   0xc   : > { %s1171_s25 = scalar_select %p105_p7, %s1081_s14, %s107_s21  }
   0xd   : > { %p162_p10 = pnand %p813_p6, %p161_p9 }
   0xe   : > { %v208_v0 = vld [vmem:[%s1315_s1] sm:$0xff] (!%p162_p10)  ;;  %v209_v1 = vld [vmem:[%s1315_s1 + $0x8] sm:$0xff] (!%p162_p10)  ;;  %p190_p11 = scmp.lt.s32.totalorder (!%p162_p10), %s1085_s15, 1  ;;  %vm210_vm0 = vcmask (!%p162_p10), 130048   ;;  %v342_v19 = vld [vmem:[%s1316_s2 + $0x10] sm:$0xff] (!%p162_p10)  ;;  %s186_s26 = sand.u32 (!%p162_p10), 1, %s1077_s13  }
   0xf   : > { %165 = sbr.rel (%p162_p10) target bundleno = 495 (0x1ef), region = 32  ;;  %v938_v2 = vpack.c.bf16 (!%p162_p10), %v209_v1, %v208_v0  ;;  %v340_v11 = vld [vmem:[%s1316_s2] sm:$0xff] (!%p162_p10)  ;;  %v341_v17 = vld [vmem:[%s1316_s2 + $0x8] sm:$0xff] (!%p162_p10)  ;;  %v343_v22 = vld [vmem:[%s1316_s2 + $0x18] sm:$0xff] (!%p162_p10)  ;;  %s814_s27 = sshll.u32 (!%p162_p10), %s186_s26, 7  ;;  %vm696_vm1 = vcmask (!%p162_p10), 261120  }
  0x10   : > { %902 = vmatprep.mubr.msk.f32.mxu1 (!%p162_p10), %vm210_vm0, %v340_v11  ;;  %s1223_s28 = scalar_lea.vmem (!%p162_p10), [#allocation2], %s814_s27  ;;  %s847_s29 = sshll.u32 (!%p162_p10), %s1085_s15, 11 }
  0x11   : > { %939 = vmatprep.subr.bf16.mxu0 (!%p162_p10), %v938_v2  ;;  %s1258_s6 = scalar_lea.hbm (!%p162_p10), %s1317_s3, %s847_s29  ;;  %s1095_s8 = smov (!%p162_p10), [#allocation2]  }
  0x12   : > { %941 = vmatpush3.bf16.msra.mxu0 (!%p162_p10), %v938_v2  ;;  %s1019_s9 = sshll.u32 (!%p162_p10), %s1095_s8, 4  ;;  %s1020_s9 = int_to_ptr.vmem [resolvable:$false] %s1019_s9 }
  0x13   : > { %s1021_s10 = scalar_lea.vmem (!%p162_p10), %s1020_s9, 4096 }
  0x16   : > { %s191_s30 = scalar_select %p190_p11, %s1085_s15, 1 }
  0x17   : > { %s1268_s15 = scalar_lea.sflag [#allocation3], %s186_s26 }
  0x18   : > { %s846_s4 = sshll.u32 %s191_s30, 6  ;;  %s730_s30 = sshll.u32 %s1223_s28, 4  ;;  %s1260_s30 = int_to_ptr.vmem [resolvable:$true] %s730_s30 }
  0x19   : > { %s197_s7 = scalar_lea.vmem %s1314_s0, %s846_s4  ;;  %p1022_p1 = scmp.lt.s32.totalorder %s1260_s30, %s1020_s9 }
  0x1a   : > { %v200_v3 = vld [vmem:[%s197_s7] sm:$0xff]  ;;  %v201_v4 = vld [vmem:[%s197_s7 + $0x8] sm:$0xff]  ;;  %v202_v5 = vld [vmem:[%s197_s7 + $0x10] sm:$0xff] }
  0x1b   : > { %886 = vmatprep.mubr.msk.f32.mxu0 %vm210_vm0, %v200_v3  ;;  %v203_v6 = vld [vmem:[%s197_s7 + $0x18] sm:$0xff]  ;;  %v204_v7 = vld [vmem:[%s197_s7 + $0x20] sm:$0xff]  ;;  %v205_v8 = vld [vmem:[%s197_s7 + $0x28] sm:$0xff] }
  0x1c   : > { %887 = vmatmul.mubr.msk.f32.vlgmr.msra.gmra.mrb[0].mxu0 %vm210_vm0, %v201_v4  ;;  %v206_v9 = vld [vmem:[%s197_s7 + $0x30] sm:$0xff]  ;;  %v207_v10 = vld [vmem:[%s197_s7 + $0x38] sm:$0xff]  ;;  %s1015_s7 = scalar_lea.vmem %s1260_s30, 2048 }
  0x1d   : > { %889 = vmatprep.mubr.msk.f32.mxu0 %vm210_vm0, %v202_v5  ;;  %p1016_p12 = scmp.ne.s32.totalorder %s1260_s30, %s1015_s7  ;;  %p1023_p2 = scmp.lt.s32.totalorder %s1021_s10, %s1015_s7 }
  0x1f   : > { %p1017_p13 = pnand %p1016_p12, %p1158_p4  ;;  %p1024_p3 = por %p1023_p2, %p1022_p1 }
  0x20   : > { %890 = vmatmul.mubr.msk.f32.gmra.mrb[2].mxu0 %vm210_vm0, %v203_v6 }
  0x21   : > { %892 = vmatprep.mubr.msk.f32.mxu0 %vm210_vm0, %v204_v7  ;;  %p1018_p0 = pneg %p1017_p13 }
  0x23   : > { %p1025_p5 = pnand %p1024_p3, %p1018_p0 }
  0x24   : > { %893 = vmatmul.mubr.msk.f32.gmra.mrb[4].mxu0 %vm210_vm0, %v205_v8 }
  0x25   : > { %895 = vmatprep.mubr.msk.f32.mxu0 %vm210_vm0, %v206_v9 }
  0x28   : > { %896 = vmatmul.mubr.msk.f32.gmra.mrb[6].mxu0 %vm210_vm0, %v207_v10 }
  0x29   : > { %922 = vmatprep.mubr.msk.f32.mxu0 %vm210_vm0, %v340_v11 }
  0xef   : > { %v888_v12 = vpop.f32.mrb[0].mxu0 }
  0xf0   : > { %v301_v13 = vpop.f32.mrb[1].mxu0 }
  0xf1   : > { %v942_v14 = vpack.c.bf16 %v888_v12, %v301_v13 }
  0xf3   : > { %v891_v15 = vpop.f32.mrb[2].mxu0  ;;  %943 = vmatprep.subr.bf16.mxu1 %v942_v14 }
  0xf4   : > { %v311_v16 = vpop.f32.mrb[3].mxu0  ;;  %945 = vmatpush3.bf16.msra.mxu1 %v942_v14 }
  0xf5   : > { %v946_v18 = vpack.c.bf16 %v891_v15, %v311_v16 }
  0xf7   : > { %v894_v20 = vpop.f32.mrb[4].mxu0  ;;  %947 = vmatprep.subr.bf16.mxu1 %v946_v18  ;;  %903 = vmatmul.mubr.msk.f32.vlgmr.msra.gmra.mrb[0].mxu1 %vm210_vm0, %v341_v17 }
  0xf8   : > { %v321_v21 = vpop.f32.mrb[5].mxu0  ;;  %949 = vmatpush3.bf16.msra.mxu1 %v946_v18  ;;  %905 = vmatprep.mubr.msk.f32.mxu1 %vm210_vm0, %v342_v19 }
  0xf9   : > { %v950_v23 = vpack.c.bf16 %v894_v20, %v321_v21 }
  0xfb   : > { %951 = vmatprep.subr.bf16.mxu0 %v950_v23  ;;  %v897_v24 = vpop.f32.mrb[6].mxu0  ;;  %906 = vmatmul.mubr.msk.f32.gmra.mrb[2].mxu1 %vm210_vm0, %v343_v22 }
  0xfc   : > { %953 = vmatpush3.bf16.msra.mxu0 %v950_v23  ;;  %v331_v25 = vpop.f32.mrb[7].mxu0  ;;  %912 = vmatprep.mubr.msk.f32.mxu1 %vm210_vm0, %v340_v11 }
  0xfd   : > { %v954_v26 = vpack.c.bf16 %v897_v24, %v331_v25 }
  0xff   : > { %955 = vmatprep.subr.bf16.mxu1 %v954_v26  ;;  %913 = vmatmul.mubr.msk.f32.vlgmr.msra.gmra.mrb[4].mxu1 %vm210_vm0, %v341_v17 }
 0x100   : > { %957 = vmatpush3.bf16.msra.mxu1 %v954_v26  ;;  %915 = vmatprep.mubr.msk.f32.mxu1 %vm210_vm0, %v342_v19 }
 0x101   : > { %923 = vmatmul.mubr.msk.f32.vlgmr.msra.gmra.mrb[8].mxu0 %vm210_vm0, %v341_v17 }
 0x102   : > { %925 = vmatprep.mubr.msk.f32.mxu0 %vm210_vm0, %v342_v19 }
 0x103   : > { %916 = vmatmul.mubr.msk.f32.gmra.mrb[6].mxu1 %vm210_vm0, %v343_v22 }
 0x104   : > { %932 = vmatprep.mubr.msk.f32.mxu1 %vm210_vm0, %v340_v11 }
 0x105   : > { %926 = vmatmul.mubr.msk.f32.gmra.mrb[10].mxu0 %vm210_vm0, %v343_v22 }
 0x107   : > { %933 = vmatmul.mubr.msk.f32.vlgmr.msra.gmra.mrb[8].mxu1 %vm210_vm0, %v341_v17 }
 0x108   : > { %935 = vmatprep.mubr.msk.f32.mxu1 %vm210_vm0, %v342_v19 }
 0x10b   : > { %936 = vmatmul.mubr.msk.f32.gmra.mrb[10].mxu1 %vm210_vm0, %v343_v22 }
 0x1ca   : > { %v904_v27 = vpop.f32.mrb[0].mxu1 }
 0x1cb   : > { %698 = vst.msk [vmem:[%s1223_s28 + $0x8] sm:$0xff] %vm696_vm1, %v904_v27  ;;  %v422_v28 = vpop.f32.mrb[1].mxu1 }
 0x1cc   : > { %697 = vst.msk [vmem:[%s1223_s28] sm:$0xff] %vm696_vm1, %v422_v28 }
 0x1ce   : > { %v907_v29 = vpop.f32.mrb[2].mxu1 }
 0x1cf   : > { %700 = vst.msk [vmem:[%s1223_s28 + $0x18] sm:$0xff] %vm696_vm1, %v907_v29  ;;  %v432_v30 = vpop.f32.mrb[3].mxu1 }
 0x1d0   : > { %699 = vst.msk [vmem:[%s1223_s28 + $0x10] sm:$0xff] %vm696_vm1, %v432_v30 }
 0x1d2   : > { %v914_v31 = vpop.f32.mrb[4].mxu1 }
 0x1d3   : > { %702 = vst.msk [vmem:[%s1223_s28 + $0x28] sm:$0xff] %vm696_vm1, %v914_v31  ;;  %v507_v32 = vpop.f32.mrb[5].mxu1 }
 0x1d4   : > { %701 = vst.msk [vmem:[%s1223_s28 + $0x20] sm:$0xff] %vm696_vm1, %v507_v32  ;;  %v924_v33 = vpop.f32.mrb[8].mxu0 }
 0x1d5   : > { %706 = vst.msk [vmem:[%s1223_s28 + $0x48] sm:$0xff] %vm696_vm1, %v924_v33  ;;  %v592_v34 = vpop.f32.mrb[9].mxu0 }
 0x1d6   : > { %v917_v35 = vpop.f32.mrb[6].mxu1  ;;  %705 = vst.msk [vmem:[%s1223_s28 + $0x40] sm:$0xff] %vm696_vm1, %v592_v34 }
 0x1d7   : > { %704 = vst.msk [vmem:[%s1223_s28 + $0x38] sm:$0xff] %vm696_vm1, %v917_v35  ;;  %v517_v36 = vpop.f32.mrb[7].mxu1 }
 0x1d8   : > { %703 = vst.msk [vmem:[%s1223_s28 + $0x30] sm:$0xff] %vm696_vm1, %v517_v36  ;;  %v927_v37 = vpop.f32.mrb[10].mxu0 }
 0x1d9   : > { %708 = vst.msk [vmem:[%s1223_s28 + $0x58] sm:$0xff] %vm696_vm1, %v927_v37  ;;  %v602_v38 = vpop.f32.mrb[11].mxu0 }
 0x1da   : > { %v934_v39 = vpop.f32.mrb[8].mxu1  ;;  %707 = vst.msk [vmem:[%s1223_s28 + $0x50] sm:$0xff] %vm696_vm1, %v602_v38 }
 0x1db   : > { %710 = vst.msk [vmem:[%s1223_s28 + $0x68] sm:$0xff] %vm696_vm1, %v934_v39  ;;  %v677_v40 = vpop.f32.mrb[9].mxu1 }
 0x1dc   : > { %709 = vst.msk [vmem:[%s1223_s28 + $0x60] sm:$0xff] %vm696_vm1, %v677_v40 }
 0x1de   : > { %v937_v41 = vpop.f32.mrb[10].mxu1 }
 0x1df   : > { %712 = vst.msk [vmem:[%s1223_s28 + $0x78] sm:$0xff] %vm696_vm1, %v937_v41  ;;  %v687_v42 = vpop.f32.mrb[11].mxu1 }
 0x1e0   : > { %711 = vst.msk [vmem:[%s1223_s28 + $0x70] sm:$0xff] %vm696_vm1, %v687_v42 }
 0x1e1   : > { %1028 = shalt.err (!%p1025_p5)
}
 0x1e2   : > { %s1029_s11 = scalar_lea.hbm %s1258_s6, 2048  ;;  %s1033_s21 = scalar_lea.hbm %s1317_s3, 4096 }
 0x1e3   : > { %p1030_p6 = scmp.ne.s32.totalorder %s1258_s6, %s1029_s11  ;;  %p1034_p10 = scmp.lt.u32.totalorder %s1258_s6, %s1317_s3 }
 0x1e4   : > { %p1035_p11 = scmp.lt.u32.totalorder %s1033_s21, %s1029_s11  ;;  %p1037_p13 = scmp.lt.u32.totalorder %s1029_s11, %s1258_s6 }
 0x1e5   : > { %p1031_p7 = pnand %p1030_p6, %p1158_p4 }
 0x1e6   : > { %p1036_p12 = por %p1035_p11, %p1034_p10 }
 0x1e7   : > { %p1032_p9 = pneg %p1031_p7 }
 0x1e8   : > { %p1038_p0 = por %p1037_p13, %p1036_p12 }
 0x1ea   : > { %p1039_p1 = pnand %p1038_p0, %p1032_p9 }
 0x1ec   : > { %1042 = shalt.err (!%p1039_p1)
}
 0x1ed   : > { %s1096_s27 = smov 128   ;;  %s1097_s28 = smov 8  }
 0x1ee   : > { %958 = dma.vmem_to_hbm [thread:$0]  (%p1158_p4), %s1260_s30, 2048, %s1258_s6, %s1268_s15, %s1096_s27, %s1096_s27, %s1097_s28  }
 0x1ef PF: > { %p964_p2 = scmp.ge.s32.totalorder %s1093_s17, 2  ;;  %s745_s29 = sand.u32 1, %s1073_s12  }
 0x1f0   : > { %s746_s4 = scalar_lea.sflag [#allocation3], %s745_s29 }
 0x1f1   : > { %p961_p3 = pnand %p964_p2, %p1165_p8 }
 0x1f3   : > { %1068 = dma.done.wait (!%p961_p3), %s746_s4, 2048  }
 0x1f4   : > { %1070 = vsyncadd (!%p961_p3), %s746_s4, 4294965248  ;;  %s16_s17 = sadd.s32 1, %s1093_s17   ;;  %s1320_s12 = smov %s1077_s13 }
 0x1f5   : > { %p13_p5 = scmp.ge.s32.totalorder %s16_s17, 4   ;;  %s1321_s13 = smov %s1081_s14 }
 0x1f6   : > { %s1322_s14 = smov %s1171_s25  ;;  %s1323_s15 = smov %s1089_s16 }
 0x1f7   : > { %s1324_s16 = smov %s1326_s20  ;;  %15 = sbr.rel (!%p13_p5) target bundleno = 4 (0x4), region = 67 }
 0x1fe   :  { %751 = vsyncpa [#allocation3], 1 }
 0x1ff   :  { %753 = vsyncpa [#allocation3 + $0x1], 1 }

</bundles_post_ra>
